<compile_context>
chip_gen: v7x
topology: tpu7x:2x2x1
jax: 0.10.0
libtpu: 0.0.40
codegen_flags: <defaults>
</compile_context>

<pallas_src>
import jax
import jax.numpy as jnp
from jax.experimental import pallas as pl
from jax.experimental.pallas import tpu as pltpu

NUM_RELATIONS = 6
LANE = 128
SUB_BF16 = 16  # bf16 sublane packing granularity


def _round_up(x, m):
    return (x + m - 1) // m * m


# ---------------------------------------------------------------------------
# Kernel 1: per-relation projection  H[r] = x @ W_r  (computed once, tiny)
# ---------------------------------------------------------------------------
def proj_kernel(x_ref, w_ref, h_ref):
    # x_ref: (tile_n, d_in) bf16   w_ref: (1, d_in, d_out_pad) bf16
    # h_ref: (1, tile_n, d_out_pad) bf16
    h_ref[0] = jnp.dot(
        x_ref[...], w_ref[0], preferred_element_type=jnp.float32
    ).astype(h_ref.dtype)


# ---------------------------------------------------------------------------
# Kernel 2: out_tile = A_cat_tile @ H_cat + x_tile @ W_root + bias
#   grid = (node tiles [parallel], K tiles over R*n_pad [arbitrary, last])
#   f32 accumulation directly in the resident output block.
# ---------------------------------------------------------------------------
def rgcn_kernel(adj_ref, h_ref, x_ref, w_root_ref, b_ref, o_ref):
    k = pl.program_id(1)

    @pl.when(k == 0)
    def _():
        o_ref[...] = (
            jnp.dot(x_ref[...], w_root_ref[...], preferred_element_type=jnp.float32)
            + b_ref[...]
        ).astype(o_ref.dtype)

    o_ref[...] += jnp.dot(
        adj_ref[...], h_ref[...], preferred_element_type=jnp.float32
    ).astype(o_ref.dtype)


def rgcn_conv(x, edge_index, edge_type, w_rel, w_root, bias, *,
              tile_n=256, tile_k=512, vmem_limit_bytes=48 * 1024 * 1024):
    """RGCNConv forward (mean aggregation, root weight, bias) via Pallas."""
    N, d_in = x.shape
    R, _, d_out = w_rel.shape
    assert R == NUM_RELATIONS

    tile_n = _round_up(min(tile_n, _round_up(N, SUB_BF16)), SUB_BF16)
    n_pad = _round_up(N, tile_n)
    d_out_pad = _round_up(d_out, LANE)  # lane-dense output: unmasked vst

    # Dense per-relation mean-normalized adjacency (built once in the wrapper).
    # TODO(synk): for graphs beyond a few thousand nodes, replace the O(R*N^2)
    # dense adjacency with a scalar-prefetch / DMA-gather edge-list formulation.
    src, dst = edge_index[0], edge_index[1]
    adj = jnp.zeros((R, n_pad, n_pad), jnp.float32)
    adj = adj.at[edge_type, dst, src].add(1.0)
    deg = jnp.sum(adj, axis=-1, keepdims=True)
    adj = adj / jnp.maximum(deg, 1.0)
    # Relation-blocked columns: A_cat[i, r*n_pad + j] = adj[r, i, j]
    adj_cat = jnp.transpose(adj, (1, 0, 2)).reshape(n_pad, R * n_pad)

    # K tiling over the concatenated source-node axis.
    k_total = R * n_pad
    if k_total <= tile_k:
        tile_k = k_total            # single K step; full-dim block is allowed
    else:
        assert tile_k % LANE == 0   # lane-dim constraint for bf16 A_cat blocks
    k_pad = _round_up(k_total, tile_k)
    if k_pad != k_total:
        adj_cat = jnp.zeros((n_pad, k_pad), jnp.float32).at[:, :k_total].set(adj_cat)

    # bf16 MXU operands (accumulation stays f32); bias stays f32.
    adj_cat = adj_cat.astype(jnp.bfloat16)
    x_p = jnp.zeros((n_pad, d_in), jnp.bfloat16).at[:N].set(x.astype(jnp.bfloat16))
    w_rel_p = jnp.zeros((R, d_in, d_out_pad), jnp.bfloat16).at[:, :, :d_out].set(
        w_rel.astype(jnp.bfloat16))
    w_root_p = jnp.zeros((d_in, d_out_pad), jnp.bfloat16).at[:, :d_out].set(
        w_root.astype(jnp.bfloat16))
    b_p = jnp.zeros((1, d_out_pad), jnp.float32).at[:, :d_out].set(
        bias.reshape(1, -1).astype(jnp.float32))

    n_tiles = n_pad // tile_n
    k_tiles = k_pad // tile_k

    # --- projection kernel: H[r] = x @ W_r (done once, not per node tile) ---
    h = pl.pallas_call(
        proj_kernel,
        out_shape=jax.ShapeDtypeStruct((R, n_pad, d_out_pad), jnp.bfloat16),
        grid=(n_tiles, R),
        in_specs=[
            pl.BlockSpec((tile_n, d_in), lambda i, r: (i, 0)),
            pl.BlockSpec((1, d_in, d_out_pad), lambda i, r: (r, 0, 0)),
        ],
        out_specs=pl.BlockSpec((1, tile_n, d_out_pad), lambda i, r: (r, i, 0)),
        compiler_params=pltpu.CompilerParams(
            dimension_semantics=("parallel", "parallel")),
    )(x_p, w_rel_p)
    h_cat = h.reshape(R * n_pad, d_out_pad)
    if k_pad != k_total:
        h_cat = jnp.zeros((k_pad, d_out_pad), jnp.bfloat16).at[:k_total].set(h_cat)

    # --- main kernel: one wide matmul per (node tile, K tile) ---
    out = pl.pallas_call(
        rgcn_kernel,
        out_shape=jax.ShapeDtypeStruct((n_pad, d_out_pad), jnp.float32),
        grid=(n_tiles, k_tiles),
        in_specs=[
            pl.BlockSpec((tile_n, tile_k), lambda i, k: (i, k)),      # A_cat tile
            pl.BlockSpec((tile_k, d_out_pad), lambda i, k: (k, 0)),   # H_cat K-slab
            pl.BlockSpec((tile_n, d_in), lambda i, k: (i, 0)),        # x tile (root)
            pl.BlockSpec((d_in, d_out_pad), lambda i, k: (0, 0)),     # W_root (resident)
            pl.BlockSpec((1, d_out_pad), lambda i, k: (0, 0)),        # bias (resident)
        ],
        out_specs=pl.BlockSpec((tile_n, d_out_pad), lambda i, k: (i, 0)),
        compiler_params=pltpu.CompilerParams(
            dimension_semantics=("parallel", "arbitrary"),
            vmem_limit_bytes=vmem_limit_bytes),
    )(adj_cat, h_cat, x_p, w_root_p, b_p)

    return out[:N, :d_out].astype(x.dtype)


def reference_rgcn(x, edge_index, edge_type, w_rel, w_root, bias):
    N = x.shape[0]
    R = w_rel.shape[0]
    src, dst = edge_index[0], edge_index[1]
    adj = jnp.zeros((R, N, N), jnp.float32).at[edge_type, dst, src].add(1.0)
    deg = jnp.sum(adj, axis=-1, keepdims=True)
    adj = adj / jnp.maximum(deg, 1.0)
    agg = jnp.einsum('rnm,md->rnd', adj, x)
    return x @ w_root + jnp.einsum('rnd,rdo->no', agg, w_rel) + bias


if __name__ == "__main__":
    # GraphEncoder_old(args).forward(x, edge_index): one RGCNConv layer.
    # TODO(synk): the PyTorch forward omits relation types (would need a
    # SparseTensor edge_index carrying them); we pass an explicit edge_type array.
    args = {'input_dim': 32, 'output_dim': 16}
    num_nodes = 12
    num_edges = 40
    d_in, d_out = args['input_dim'], args['output_dim']

    key = jax.random.PRNGKey(0)
    kx, ks, kd, kt, kw, kr, kb = jax.random.split(key, 7)

    x = jax.random.normal(kx, (num_nodes, d_in), dtype=jnp.float32)
    src = jax.random.randint(ks, (num_edges,), 0, num_nodes)
    dst = jax.random.randint(kd, (num_edges,), 0, num_nodes)
    edge_index = jnp.stack([src, dst]).astype(jnp.int32)
    edge_type = jax.random.randint(kt, (num_edges,), 0, NUM_RELATIONS).astype(jnp.int32)

    bound = 1.0 / float(jnp.sqrt(jnp.float32(d_in)))
    w_rel = jax.random.uniform(kw, (NUM_RELATIONS, d_in, d_out), jnp.float32, -bound, bound)
    w_root = jax.random.uniform(kr, (d_in, d_out), jnp.float32, -bound, bound)
    bias = jax.random.uniform(kb, (1, d_out), jnp.float32, -bound, bound)

    out = rgcn_conv(x, edge_index, edge_type, w_rel, w_root, bias)
    jax.block_until_ready(out)

    ref = reference_rgcn(x, edge_index, edge_type, w_rel, w_root, bias)
    assert out.shape == (num_nodes, d_out)
    # bf16 MXU operands (f32 accumulate) -> relaxed tolerance vs. f32 reference.
    assert jnp.allclose(out, ref, atol=5e-2, rtol=5e-2), "mismatch vs reference"

    print("KERNEL_OK")
</pallas_src>

<mosaic_0001>
module attributes {stable_mosaic.version = 11 : i64} {
  func.func @proj_kernel(%arg0: i32, %arg1: i32, %arg2: memref<16x32xbf16, #tpu.memory_space<vmem>>, %arg3: memref<1x32x128xbf16, #tpu.memory_space<vmem>>, %arg4: memref<1x16x128xbf16, #tpu.memory_space<vmem>>) attributes {dimension_semantics = [#tpu.dimension_semantics<parallel>, #tpu.dimension_semantics<parallel>], iteration_bounds = array<i64: 1, 6>, scalar_prefetch = 0 : i64, scratch_operands = 0 : i64, tpu.core_type = #tpu.core_type<tc>, window_params = [{transform_indices = @transform_0, window_bounds = array<i64: 16, 32>}, {transform_indices = @transform_1, window_bounds = array<i64: 1, 32, 128>}, {transform_indices = @transform_2, window_bounds = array<i64: 1, 16, 128>}]} {
    %c0 = arith.constant 0 : index
    %c0_0 = arith.constant 0 : index
    %0 = vector.load %arg2[%c0, %c0_0] : memref<16x32xbf16, #tpu.memory_space<vmem>>, vector<16x32xbf16>
    %c0_1 = arith.constant 0 : index
    %c0_2 = arith.constant 0 : index
    %c0_3 = arith.constant 0 : index
    %1 = vector.load %arg3[%c0_1, %c0_2, %c0_3] : memref<1x32x128xbf16, #tpu.memory_space<vmem>>, vector<1x32x128xbf16>
    %2 = vector.shape_cast %1 : vector<1x32x128xbf16> to vector<32x128xbf16>
    %cst = arith.constant dense<0.000000e+00> : vector<16x128xf32>
    %3 = tpu.matmul %0, %2, %cst {dimension_numbers = #tpu.dot_dimension_numbers<[1], [0], [0], [1], [0, 0, 1, 1], [], []>} : vector<16x32xbf16>, vector<32x128xbf16>, vector<16x128xf32> -> vector<16x128xf32>
    %4 = arith.truncf %3 : vector<16x128xf32> to vector<16x128xbf16>
    %c0_4 = arith.constant 0 : index
    %c0_5 = arith.constant 0 : index
    %c0_6 = arith.constant 0 : index
    %5 = vector.load %arg4[%c0_4, %c0_5, %c0_6] : memref<1x16x128xbf16, #tpu.memory_space<vmem>>, vector<1x16x128xbf16>
    %6 = vector.shape_cast %5 : vector<1x16x128xbf16> to vector<16x128xbf16>
    %7 = vector.shape_cast %4 : vector<16x128xbf16> to vector<1x16x128xbf16>
    tpu.vector_store %arg4[%c0_4, %c0_5, %c0_6], %7 {strides = array<i32>} : memref<1x16x128xbf16, #tpu.memory_space<vmem>>, vector<1x16x128xbf16>,
    return
  }
  func.func @transform_0(%arg0: i32, %arg1: i32) -> (i32, i32) {
    %c0_i32 = arith.constant 0 : i32
    %c0_i32_0 = arith.constant 0 : i32
    return %arg0, %c0_i32 : i32, i32
  }
  func.func @transform_1(%arg0: i32, %arg1: i32) -> (i32, i32, i32) {
    %c0_i32 = arith.constant 0 : i32
    %c0_i32_0 = arith.constant 0 : i32
    %c0_i32_1 = arith.constant 0 : i32
    return %arg1, %c0_i32, %c0_i32_0 : i32, i32, i32
  }
  func.func @transform_2(%arg0: i32, %arg1: i32) -> (i32, i32, i32) {
    %c0_i32 = arith.constant 0 : i32
    %c0_i32_0 = arith.constant 0 : i32
    return %arg1, %arg0, %c0_i32 : i32, i32, i32
  }
}

</mosaic_0001>

<bundles_post_ra>
// kernel: tpu_custom_call.1
= control target key start
LH: loop header
LB: loop body
LE: loop exit
PB: predicated region body
PF: predicated region fallthrough
CT: control target
= control target key end

     0   :  { %7 = vsyncpa [#allocation3], 0  ;;  %s913_s0 = inlined_call_operand.hbm [shape: bf16[16,32], index: 0, kind: input, shape index: {}]   ;;  %s914_s1 = inlined_call_operand.hbm [shape: bf16[6,32,128], index: 1, kind: input, shape index: {}]   ;;  %s915_s2 = inlined_call_operand.hbm [shape: bf16[6,16,128], index: 2, kind: output, shape index: {}]  }
   0x1   :  { %8 = vsyncpa [#allocation6], 0 }
   0x2   :  { %10 = vsyncpa [#allocation6 + $0x1], 0 }
   0x3   :  { %11 = vsyncpa [#allocation4], 0 }
   0x4   :  { %13 = vsyncpa [#allocation4 + $0x1], 0  ;;  %s689_s9 = smov 0   ;;  %s691_s10 = smov 0  }
   0x5   :  { %s693_s11 = smov 0   ;;  %s695_s12 = smov 0  }
   0x6   :  { %s697_s13 = smov 0   ;;  %s699_s14 = smov 0  }
   0x7 LB: > { %s394_s15 = sadd.s32 4294967295, %s663_s14   ;;  %s395_s16 = sadd.s32 4294967294, %s663_s14   ;;  %s663_s14 = sphi %s699_s14, %s19_s14   ;;  %s659_s13 = sphi %s697_s13, %s938_s13   ;;  %s655_s12 = sphi %s695_s12, %s937_s12   ;;  %s651_s11 = sphi %s693_s11, %s936_s11   ;;  %s647_s10 = sphi %s691_s10, %s935_s10   ;;  %s643_s9 = sphi %s689_s9, %s934_s9  }
   0x8   : > { %p77_p0 = scmp.ne.s32.totalorder %s647_s10, %s643_s9  ;;  %p723_p1 = scmp.eq.s32.totalorder %s394_s15, 0 }
   0x9   : > { %p727_p2 = scmp.eq.s32.totalorder %s394_s15, 5  ;;  %p109_p3 = scmp.eq.s32.totalorder %s395_s16, 5 }
   0xa   : > { %s920_s17 = scalar_select %p723_p1, 1, 0 }
   0xb   : > { %s921_s18 = scalar_select %p727_p2, 1, 0 }
   0xc   : > { %p733_p4 = por %p723_p1, %p77_p0  ;;  %p396_p5 = scmp.ge.s32.totalorder %s663_s14, 1 }
   0xd   : > { %p738_p6 = por %p109_p3, %p77_p0  ;;  %p116_p7 = scmp.lt.s32.totalorder %s663_s14, 7 }
   0xe   : > { %s922_s19 = scalar_select %p733_p4, 1, 0 }
   0xf   : > { %s923_s20 = scalar_select %p738_p6, 1, 0 }
  0x10   : > { %p743_p8 = pnand %p396_p5, %p116_p7  ;;  %s665_s22 = smov [#allocation2]  }
  0x11   : > { %s131_s23 = sshll.u32 %s665_s22, 4  ;;  %s28_s25 = sadd.s32 1, %s659_s13  ;;  %s132_s23 = int_to_ptr.vmem [resolvable:$true] %s131_s23 }
  0x12   : > { %s924_s21 = scalar_select %p743_p8, 1, 0 }
  0x13   : > { %p445_p9 = pneg %p743_p8  ;;  %s519_s28 = scalar_lea.hbm %s913_s0, 128 }
  0x14   : > { %p520_p11 = scmp.ne.s32.totalorder %s913_s0, %s519_s28  ;;  %p526_p3 = scmp.lt.u32.totalorder %s519_s28, %s913_s0 }
  0x15   : > { %p751_p10 = pnand %p445_p9, %p723_p1 }
  0x17   : > { %p521_p12 = pneg %p751_p10 }
  0x19   : > { %p522_p13 = pnand %p521_p12, %p520_p11 }
  0x1b   : > { %p523_p0 = pneg %p522_p13 }
  0x1d   : > { %p528_p5 = pnand %p526_p3, %p523_p0 }
  0x1f   : > { %531 = shalt.err (!%p528_p5)
}
  0x20   : > { %s532_s5 = scalar_lea.vmem %s132_s23, 128  ;;  %p540_p4 = scmp.lt.s32.totalorder %s132_s23, %s132_s23 }
  0x21   : > { %p533_p7 = scmp.ne.s32.totalorder %s132_s23, %s532_s5  ;;  %p541_p1 = scmp.lt.s32.totalorder %s532_s5, %s532_s5 }
  0x23   : > { %p535_p9 = pnand %p533_p7, %p521_p12  ;;  %p542_p8 = por %p541_p1, %p540_p4 }
  0x25   : > { %p536_p6 = pneg %p535_p9 }
  0x27   : > { %p543_p2 = pnand %p542_p8, %p536_p6 }
  0x29   : > { %546 = shalt.err (!%p543_p2)
}
  0x2a   : > { %s666_s6 = smov 64   ;;  %s667_s7 = smov 4  }
  0x2b   : > { %448 = dma.hbm_to_vmem [thread:$0]  (!%p751_p10), %s913_s0, 128, %s132_s23, [#allocation3], %s666_s6, %s666_s6, %s667_s7  }
  0x2c   : > { %p29_p1 = scmp.ge.s32.totalorder %s28_s25, 6  ;;  %s64_s16 = sadd.s32 1, %s651_s11 }
  0x2d   : > { %p71_p2 = scmp.ne.s32.totalorder %s651_s11, %s647_s10  ;;  %p72_p4 = scmp.eq.s32.totalorder %s663_s14, 0 }
  0x2e   : > { %s940_s25 = smov (%p29_p1, %s28_s25), 0  ;;  %p927_p8 = scmp.ne.s32.totalorder %s921_s18, 0 }
  0x2f   : > { %p781_p6 = por %p72_p4, %p71_p2  ;;  %s61_s26 = ssub.s32 %s659_s13, %s940_s25 }
  0x30   : > { %p787_p11 = por %p927_p8, %p71_p2  ;;  %p458_p12 = scmp.lt.s32.totalorder %s663_s14, 6 }
  0x31   : > { %p62_p10 = scmp.eq.s32.totalorder %s61_s26, 0  ;;  %s145_s23 = sand.u32 1, %s651_s11  }
  0x32   : > { %s399_s27 = sshll.u32 %s145_s23, 4  ;;  %s417_s29 = sshll.u32 %s659_s13, 8 }
  0x33   : > { %s796_s28 = scalar_select %p62_p10, %s651_s11, %s64_s16  }
  0x34   : > { %s802_s4 = scalar_lea.hbm %s914_s1, %s417_s29  ;;  %s149_s18 = scalar_lea.vmem [#allocation5], %s399_s27 }
  0x35   : > { %s156_s5 = sshll.u32 %s149_s18, 4  ;;  %p808_p13 = pnand %p458_p12, %p781_p6  ;;  %s804_s5 = int_to_ptr.vmem [resolvable:$true] %s156_s5 }
  0x36   : > { %s812_s15 = scalar_lea.sflag [#allocation6], %s145_s23  ;;  %s547_s16 = scalar_lea.hbm %s802_s4, 256 }
  0x37   : > { %p548_p0 = scmp.ne.s32.totalorder %s802_s4, %s547_s16  ;;  %p549_p3 = pneg %p808_p13 }
  0x38   : > { %s552_s22 = scalar_lea.hbm %s914_s1, 1536  ;;  %p553_p9 = scmp.lt.u32.totalorder %s802_s4, %s914_s1 }
  0x39   : > { %p550_p5 = pnand %p549_p3, %p548_p0  ;;  %p554_p1 = scmp.lt.u32.totalorder %s552_s22, %s547_s16 }
  0x3a   : > { %p556_p4 = scmp.lt.u32.totalorder %s547_s16, %s802_s4 }
  0x3b   : > { %p551_p7 = pneg %p550_p5  ;;  %p555_p2 = por %p554_p1, %p553_p9 }
  0x3d   : > { %p557_p6 = por %p556_p4, %p555_p2 }
  0x3f   : > { %p558_p8 = pnand %p557_p6, %p551_p7 }
  0x41   : > { %561 = shalt.err (!%p558_p8)
}
  0x42   : > { %s562_s23 = scalar_lea.vmem %s804_s5, 256  ;;  %s668_s3 = smov [#allocation5]  }
  0x43   : > { %p563_p12 = scmp.ne.s32.totalorder %s804_s5, %s562_s23  ;;  %s567_s18 = sshll.u32 %s668_s3, 4  ;;  %s568_s18 = int_to_ptr.vmem [resolvable:$false] %s567_s18 }
  0x44   : > { %s569_s26 = scalar_lea.vmem %s568_s18, 512  ;;  %p570_p5 = scmp.lt.s32.totalorder %s804_s5, %s568_s18 }
  0x45   : > { %p565_p10 = pnand %p563_p12, %p549_p3  ;;  %p571_p9 = scmp.lt.s32.totalorder %s569_s26, %s562_s23 }
  0x47   : > { %p566_p0 = pneg %p565_p10  ;;  %p572_p1 = por %p571_p9, %p570_p5 }
  0x49   : > { %p573_p2 = pnand %p572_p1, %p566_p0 }
  0x4b   : > { %576 = shalt.err (!%p573_p2)
}
  0x4c   : > { %452 = dma.hbm_to_vmem [thread:$0]  (!%p808_p13), %s802_s4, 256, %s804_s5, %s812_s15, %s666_s6, %s666_s6, %s667_s7  }
  0x4d   : > { %p930_p3 = scmp.ne.s32.totalorder %s924_s21, 0 }
  0x4e   : > { %p931_p7 = scmp.ne.s32.totalorder (!%p930_p3), %s920_s17, 0 }
  0x4f   : > { %168 = sbr.rel (%p930_p3) target bundleno = 331 (0x14b), region = 28 }
  0x56   : > { %630 = dma.done.wait (%p931_p7), [#allocation3], 128  }
  0x57   : > { %632 = vsyncadd (%p931_p7), [#allocation3], 4294967168  ;;  %s850_s16 = sand.u32 1, %s647_s10   ;;  %p932_p4 = scmp.ne.s32.totalorder %s922_s19, 0 }
  0x58   : > { %s404_s8 = sshll.u32 %s850_s16, 4  ;;  %s175_s27 = scalar_lea.sflag [#allocation6], %s850_s16 }
  0x59   : > { %s178_s22 = scalar_lea.vmem [#allocation5], %s404_s8 }
  0x5a   : > { %634 = dma.done.wait (%p932_p4), %s175_s27, 256  }
  0x5b   : > { %636 = vsyncadd (%p932_p4), %s175_s27, 4294967040  ;;  %v669_v0 = vmov 0.0   ;;  %vm670_vm0 = vmmov 0   ;;  %v516_v1 = vld [vmem:[%s178_s22] sm:$0xff]   ;;  %v517_v2 = vld [vmem:[%s178_s22 + $0x8] sm:$0xff]   ;;  %vm225_vm1 = vcmask 261120  }
  0x5c   : > { %429 = vmatprep.subr.bf16.mxu0 %v669_v0  ;;  %433 = vmatprep.mubr.msk.bf16.mxu0 %vm670_vm0, %v669_v0  ;;  %v518_v3 = vld [vmem:[#allocation2] sm:$0xff]   ;;  %s405_s17 = sshll.u32 %s850_s16, 3  ;;  %s420_s6 = sshll.u32 %s655_s12, 7 }
  0x5d   : > { %430 = vmatpush3.bf16.msra.mxu0 %v516_v1  ;;  %s198_s21 = scalar_lea.vmem [#allocation7], %s405_s17  ;;  %s865_s5 = scalar_lea.hbm %s915_s2, %s420_s6 }
  0x5e   : > { %431 = vmatprep.subr.bf16.mxu0 %v669_v0  ;;  %s296_s19 = sshll.u32 %s198_s21, 4  ;;  %s281_s15 = scalar_lea.sflag [#allocation4], %s850_s16  ;;  %s860_s19 = int_to_ptr.vmem [resolvable:$true] %s296_s19 }
  0x5f   : > { %s577_s29 = scalar_lea.vmem %s860_s19, 128  ;;  %s671_s12 = smov [#allocation7]  }
  0x60   : > { %p578_p13 = scmp.ne.s32.totalorder %s860_s19, %s577_s29  ;;  %s581_s30 = sshll.u32 %s671_s12, 4  ;;  %s582_s30 = int_to_ptr.vmem [resolvable:$false] %s581_s30 }
  0x61   : > { %432 = vmatpush3.bf16.msra.mxu0 %v517_v2  ;;  %s583_s23 = scalar_lea.vmem %s582_s30, 256  ;;  %p584_p12 = scmp.lt.s32.totalorder %s860_s19, %s582_s30 }
  0x62   : > { %p579_p6 = pnand %p578_p13, %p787_p11  ;;  %p585_p10 = scmp.lt.s32.totalorder %s583_s23, %s577_s29 }
  0x64   : > { %434 = vmatmul.mubr.msk.bf16.vlgmr.msra.gmra.mrb[0].mxu0 %vm225_vm1, %v518_v3  ;;  %p580_p8 = pneg %p579_p6  ;;  %p586_p0 = por %p585_p10, %p584_p12 }
  0x66   : > { %p587_p5 = pnand %p586_p0, %p580_p8 }
 0x137   : > { %v263_v4 = vpop.f32.mrb[0].mxu0 }
 0x138   : > { %v435_v5 = vpop.f32.mrb[1].mxu0 }
 0x139   : > { %v266_v6 = vpop.f32.mrb[2].mxu0 }
 0x13a   : > { %v424_v7 = vpack.c.bf16 %v266_v6, %v263_v4  ;;  %v436_v8 = vpop.f32.mrb[3].mxu0 }
 0x13c   : > { %425 = vst [vmem:[%s198_s21] sm:$0xff] %v424_v7  }
 0x13d   : > { %590 = shalt.err (!%p587_p5)
}
 0x13e   : > { %s591_s3 = scalar_lea.hbm %s865_s5, 128  ;;  %s595_s8 = scalar_lea.hbm %s915_s2, 768 }
 0x13f   : > { %p592_p9 = scmp.ne.s32.totalorder %s865_s5, %s591_s3  ;;  %p596_p3 = scmp.lt.u32.totalorder %s865_s5, %s915_s2 }
 0x140   : > { %p597_p7 = scmp.lt.u32.totalorder %s595_s8, %s591_s3  ;;  %p599_p13 = scmp.lt.u32.totalorder %s591_s3, %s865_s5 }
 0x141   : > { %p593_p1 = pnand %p592_p9, %p787_p11 }
 0x142   : > { %p598_p4 = por %p597_p7, %p596_p3 }
 0x143   : > { %p594_p2 = pneg %p593_p1 }
 0x144   : > { %p600_p6 = por %p599_p13, %p598_p4 }
 0x146   : > { %p601_p8 = pnand %p600_p6, %p594_p2 }
 0x148   : > { %604 = shalt.err (!%p601_p8)
}
 0x149   : > { %s672_s17 = smov 64   ;;  %s673_s21 = smov 4  }
 0x14a   : > { %443 = dma.vmem_to_hbm [thread:$0]  (%p787_p11), %s860_s19, 128, %s865_s5, %s281_s15, %s672_s17, %s672_s17, %s673_s21  }
 0x14b PF: > { %p460_p12 = scmp.ge.s32.totalorder %s663_s14, 2  ;;  %s311_s6 = sand.u32 1, %s643_s9  }
 0x14c   : > { %p933_p10 = scmp.ne.s32.totalorder %s923_s20, 0  ;;  %s312_s7 = scalar_lea.sflag [#allocation4], %s311_s6 }
 0x14e   : > { %p454_p0 = pnand %p460_p12, %p933_p10 }
 0x150   : > { %638 = dma.done.wait (!%p454_p0), %s312_s7, 128  }
 0x151   : > { %640 = vsyncadd (!%p454_p0), %s312_s7, 4294967168  ;;  %s19_s14 = sadd.s32 1, %s663_s14   ;;  %s934_s9 = smov %s647_s10 }
 0x152   : > { %p16_p5 = scmp.ge.s32.totalorder %s19_s14, 8   ;;  %s935_s10 = smov %s651_s11 }
 0x153   : > { %s936_s11 = smov %s796_s28  ;;  %s937_s12 = smov %s659_s13 }
 0x154   : > { %s938_s13 = smov %s940_s25  ;;  %18 = sbr.rel (!%p16_p5) target bundleno = 7 (0x7), region = 79 }
 0x15b   :  { %317 = vsyncpa [#allocation3], 1 }
 0x15c   :  { %319 = vsyncpa [#allocation3 + $0x1], 1 }
 0x15d   :  { %320 = vsyncpa [#allocation6], 1 }
 0x15e   :  { %322 = vsyncpa [#allocation6 + $0x1], 1 }
 0x15f   :  { %323 = vsyncpa [#allocation4], 1 }
 0x160   :  { %325 = vsyncpa [#allocation4 + $0x1], 1 }

</bundles_post_ra>
